<compile_context>
chip_gen: v6e
topology: v6e:2x2x1
jax: 0.10.0
libtpu: 0.0.40
codegen_flags: <defaults>
</compile_context>

<pallas_src>
import functools

import jax
import jax.numpy as jnp
from jax.experimental import pallas as pl
from jax.experimental.pallas import tpu as pltpu


def _round_up(x: int, m: int) -> int:
    return ((x + m - 1) // m) * m


def linear_kernel(x_ref, wt_ref, b_ref, o_ref):
    # x_ref:  (tb, D_in)      input batch tile (VMEM)
    # wt_ref: (D_in, Dout_p)  pre-transposed, 128-padded weight (grid-invariant)
    # b_ref:  (1, Dout_p)     128-padded bias row (f32)
    # o_ref:  (tb, Dout_p)    lane-dense output tile
    acc = jnp.dot(x_ref[...], wt_ref[...], preferred_element_type=jnp.float32)
    o_ref[...] = (acc + b_ref[...]).astype(o_ref.dtype)


def prepare_params(weight, bias, *, compute_dtype=jnp.float32):
    """One-time parameter prep (hoisted out of the forward path).

    weight: (D_out, D_in)  -- PyTorch nn.Linear convention
    bias:   (D_out,)
    Returns:
      wt_p: (D_in, round_up(D_out, 128)) in compute_dtype (pre-transposed)
      b_p:  (1,   round_up(D_out, 128)) in float32
    """
    D_out, D_in = weight.shape
    dout_p = _round_up(D_out, 128)
    wt_p = jnp.pad(weight.T.astype(compute_dtype), ((0, 0), (0, dout_p - D_out)))
    b_p = jnp.pad(bias.astype(jnp.float32), (0, dout_p - D_out)).reshape(1, dout_p)
    return wt_p, b_p


def _choose_tb(B: int, tb_cap: int = 1024) -> int:
    """Pick a batch tile.

    - B <= 16: one full block (block dim == full array dim, always legal).
    - otherwise: ~B/2 rounded up to 16 sublanes (even 2-step grid so both
      v7x TensorCores get real work), capped at tb_cap for VMEM headroom.
    """
    if B <= 16:
        return B
    half = _round_up(-(-B // 2), 16)
    return min(tb_cap, half)


@functools.partial(jax.jit, static_argnames=("d_out", "tb", "slice_output"))
def _muril_head_pallas(x, wt_p, b_p, *, d_out, tb, slice_output):
    B, D_in = x.shape
    d_in_w, dout_p = wt_p.shape
    assert d_in_w == D_in, "weight was prepared for a different input_dim"

    grid = (pl.cdiv(B, tb),)

    itemsize = jnp.dtype(x.dtype).itemsize
    cost = pl.CostEstimate(
        flops=2 * B * D_in * dout_p,
        transcendentals=0,
        bytes_accessed=(B * D_in * itemsize
                        + D_in * dout_p * jnp.dtype(wt_p.dtype).itemsize
                        + dout_p * 4
                        + B * dout_p * itemsize),
    )

    out = pl.pallas_call(
        linear_kernel,
        out_shape=jax.ShapeDtypeStruct((B, dout_p), x.dtype),
        grid_spec=pl.GridSpec(
            grid=grid,
            in_specs=[
                pl.BlockSpec((tb, D_in), lambda i: (i, 0)),
                pl.BlockSpec((D_in, dout_p), lambda i: (0, 0)),
                pl.BlockSpec((1, dout_p), lambda i: (0, 0)),
            ],
            out_specs=pl.BlockSpec((tb, dout_p), lambda i: (i, 0)),
        ),
        compiler_params=pltpu.CompilerParams(
            dimension_semantics=("parallel",)),
        cost_estimate=cost,
    )(x, wt_p, b_p)

    if slice_output:
        out = out[:, :d_out]
    return out


def muril_classifier_forward_prepared(x, wt_p, b_p, *, d_out, tb=None,
                                      slice_output=True, use_pallas=None):
    """y = x @ W^T + b with pre-transposed / 128-padded params.

    x:    (B, D_in)   -- streamed as-is (no pad, no dtype cast)
    wt_p: (D_in, Dout_p), b_p: (1, Dout_p)  from prepare_params
    slice_output=False returns the padded (B, Dout_p) slab for a fused
    downstream consumer (softmax/argmax/loss) to avoid the extra HBM pass.
    """
    B, D_in = x.shape
    dout_p = wt_p.shape[1]

    if use_pallas is None:
        # Below ~1 MFLOP the custom-call launch + DMA setup dominate: use XLA.
        use_pallas = (2 * B * D_in * dout_p) >= (1 << 20)
    if not use_pallas:
        y = (x @ wt_p.astype(x.dtype)) + b_p.astype(x.dtype)
        return y[:, :d_out] if slice_output else y

    if tb is None:
        tb = _choose_tb(B)
    return _muril_head_pallas(x, wt_p, b_p, d_out=int(d_out), tb=int(tb),
                              slice_output=bool(slice_output))


def muril_classifier_forward(x, weight, bias, *, tb=None, slice_output=True,
                             use_pallas=None):
    """Convenience wrapper matching torch.nn.Linear(weight, bias) semantics."""
    wt_p, b_p = prepare_params(weight, bias, compute_dtype=x.dtype)
    return muril_classifier_forward_prepared(
        x, wt_p, b_p, d_out=weight.shape[0], tb=tb,
        slice_output=slice_output, use_pallas=use_pallas)


if __name__ == "__main__":
    # Small shapes consistent with the module: a batch of embedded sentences
    # (input_dim features) classified into output_dim classes.
    batch = 8
    input_dim = 32     # X_resampled.shape[1] stand-in
    output_dim = 4     # len(np.unique(Y_resampled)) stand-in

    key = jax.random.PRNGKey(0)
    kx, kw, kb = jax.random.split(key, 3)

    x = jax.random.normal(kx, (batch, input_dim), dtype=jnp.float32)
    bound = 1.0 / (input_dim ** 0.5)
    weight = jax.random.uniform(kw, (output_dim, input_dim),
                                minval=-bound, maxval=bound, dtype=jnp.float32)
    bias = jax.random.uniform(kb, (output_dim,),
                              minval=-bound, maxval=bound, dtype=jnp.float32)

    # One-time param prep (hoisted; like storing the weight pre-transposed).
    wt_p, b_p = prepare_params(weight, bias)
    y_ref = x @ weight.T + bias

    # ---- Pallas path, single-block grid ---------------------------------
    y = muril_classifier_forward_prepared(x, wt_p, b_p, d_out=output_dim,
                                          use_pallas=True)
    y = jax.block_until_ready(y)
    assert y.shape == (batch, output_dim)
    assert jnp.allclose(y, y_ref, atol=1e-5, rtol=1e-5)

    # ---- Pallas path, ragged batch (cdiv grid, masked partial last block) -
    x2 = jax.random.normal(jax.random.PRNGKey(1), (20, input_dim),
                           dtype=jnp.float32)
    y2 = muril_classifier_forward_prepared(x2, wt_p, b_p, d_out=output_dim,
                                           tb=16, use_pallas=True)
    y2 = jax.block_until_ready(y2)
    y2_ref = x2 @ weight.T + bias
    assert y2.shape == (20, output_dim)
    assert jnp.allclose(y2, y2_ref, atol=1e-5, rtol=1e-5)

    # ---- Pallas path, unsliced lane-dense slab for a fused consumer ------
    y3 = muril_classifier_forward_prepared(x, wt_p, b_p, d_out=output_dim,
                                           slice_output=False, use_pallas=True)
    y3 = jax.block_until_ready(y3)
    assert y3.shape == (batch, 128)
    assert jnp.allclose(y3[:, :output_dim], y_ref, atol=1e-5, rtol=1e-5)

    print("KERNEL_OK")
</pallas_src>

<mosaic_0001>
module attributes {stable_mosaic.version = 11 : i64} {
  func.func @linear_kernel(%arg0: i32, %arg1: memref<8x32xf32, #tpu.memory_space<vmem>>, %arg2: memref<32x128xf32, #tpu.memory_space<vmem>>, %arg3: memref<1x128xf32, #tpu.memory_space<vmem>>, %arg4: memref<8x128xf32, #tpu.memory_space<vmem>>) attributes {dimension_semantics = [#tpu.dimension_semantics<parallel>], iteration_bounds = array<i64: 1>, scalar_prefetch = 0 : i64, scratch_operands = 0 : i64, tpu.core_type = #tpu.core_type<tc>, window_params = [{transform_indices = @transform_0, window_bounds = array<i64: 8, 32>}, {pipeline_mode = #tpu.pipeline_mode<synchronous>, transform_indices = @transform_1, window_bounds = array<i64: 32, 128>}, {pipeline_mode = #tpu.pipeline_mode<synchronous>, transform_indices = @transform_2, window_bounds = array<i64: 1, 128>}, {transform_indices = @transform_3, window_bounds = array<i64: 8, 128>}]} {
    %c0 = arith.constant 0 : index
    %c0_0 = arith.constant 0 : index
    %0 = vector.load %arg1[%c0, %c0_0] : memref<8x32xf32, #tpu.memory_space<vmem>>, vector<8x32xf32>
    %c0_1 = arith.constant 0 : index
    %c0_2 = arith.constant 0 : index
    %1 = vector.load %arg2[%c0_1, %c0_2] : memref<32x128xf32, #tpu.memory_space<vmem>>, vector<32x128xf32>
    %cst = arith.constant dense<0.000000e+00> : vector<8x128xf32>
    %2 = tpu.matmul %0, %1, %cst {dimension_numbers = #tpu.dot_dimension_numbers<[1], [0], [0], [1], [0, 0, 1, 1], [], []>} : vector<8x32xf32>, vector<32x128xf32>, vector<8x128xf32> -> vector<8x128xf32>
    %c0_3 = arith.constant 0 : index
    %c0_4 = arith.constant 0 : index
    %3 = vector.load %arg3[%c0_3, %c0_4] : memref<1x128xf32, #tpu.memory_space<vmem>>, vector<1x128xf32>
    %4 = vector.broadcast %3 : vector<1x128xf32> to vector<8x128xf32>
    %5 = arith.addf %2, %4 : vector<8x128xf32>
    %c0_5 = arith.constant 0 : index
    %c0_6 = arith.constant 0 : index
    %6 = vector.load %arg4[%c0_5, %c0_6] : memref<8x128xf32, #tpu.memory_space<vmem>>, vector<8x128xf32>
    tpu.vector_store %arg4[%c0_5, %c0_6], %5 {strides = array<i32>} : memref<8x128xf32, #tpu.memory_space<vmem>>, vector<8x128xf32>,
    return
  }
  func.func @transform_0(%arg0: i32) -> (i32, i32) {
    %c0_i32 = arith.constant 0 : i32
    %c0_i32_0 = arith.constant 0 : i32
    return %arg0, %c0_i32 : i32, i32
  }
  func.func @transform_1(%arg0: i32) -> (i32, i32) {
    %c0_i32 = arith.constant 0 : i32
    %c0_i32_0 = arith.constant 0 : i32
    %c0_i32_1 = arith.constant 0 : i32
    return %c0_i32, %c0_i32_0 : i32, i32
  }
  func.func @transform_2(%arg0: i32) -> (i32, i32) {
    %c0_i32 = arith.constant 0 : i32
    %c0_i32_0 = arith.constant 0 : i32
    %c0_i32_1 = arith.constant 0 : i32
    return %c0_i32, %c0_i32_0 : i32, i32
  }
  func.func @transform_3(%arg0: i32) -> (i32, i32) {
    %c0_i32 = arith.constant 0 : i32
    %c0_i32_0 = arith.constant 0 : i32
    return %arg0, %c0_i32 : i32, i32
  }
}

</mosaic_0001>

<bundles_post_ra>
// kernel: _muril_head_pallas.1
= control target key start
LH: loop header
LB: loop body
LE: loop exit
PB: predicated region body
PF: predicated region fallthrough
CT: control target
= control target key end

     0   :  { %8 = vsyncpa [#allocation3], 0  ;;  %s239_s0 = inlined_call_operand.hbm [shape: f32[8,32], index: 0, kind: input, shape index: {}]   ;;  %s240_s1 = inlined_call_operand.hbm [shape: f32[32,128], index: 1, kind: input, shape index: {}]   ;;  %s241_s2 = inlined_call_operand.vmem [shape: f32[1,128], index: 2, kind: input, shape index: {}]   ;;  %s242_s3 = inlined_call_operand.vmem [shape: f32[8,128], index: 3, kind: output, shape index: {}]  }
   0x1   :  { %9 = vsyncpa [#allocation5], 0  ;;  %s201_s12 = smov [#allocation2]   ;;  %s202_s14 = smov [#allocation4]  }
   0x2   :  { %s16_s13 = sshll.u32 %s201_s12, 4  ;;  %s25_s15 = sshll.u32 %s202_s14, 4  ;;  %s17_s13 = int_to_ptr.vmem [resolvable:$true] %s16_s13  ;;  %s26_s15 = int_to_ptr.vmem [resolvable:$true] %s25_s15 }
   0x3   :  { %s165_s16 = scalar_lea.vmem %s17_s13, 128  ;;  %p170_p1 = scmp.lt.s32.totalorder %s17_s13, %s17_s13 }
   0x4   :  { %p166_p0 = scmp.ne.s32.totalorder %s17_s13, %s165_s16  ;;  %p171_p2 = scmp.lt.s32.totalorder %s165_s16, %s165_s16 }
   0x6   :  { %p172_p3 = por %p171_p2, %p170_p1 }
   0x8   :  { %p173_p4 = pnand %p172_p3, %p166_p0 }
   0xa   :  { %176 = shalt.err (!%p173_p4)
}
   0xb   :  { %19 = dma.hbm_to_vmem [thread:$0]  %s239_s0, 128, %s17_s13, [#allocation3]  }
   0xc   :  { %s185_s19 = scalar_lea.vmem %s26_s15, 512  ;;  %p190_p6 = scmp.lt.s32.totalorder %s26_s15, %s26_s15 }
   0xd   :  { %p186_p5 = scmp.ne.s32.totalorder %s26_s15, %s185_s19  ;;  %p191_p7 = scmp.lt.s32.totalorder %s185_s19, %s185_s19 }
   0xf   :  { %p192_p8 = por %p191_p7, %p190_p6 }
  0x11   :  { %p193_p9 = pnand %p192_p8, %p186_p5 }
  0x13   :  { %196 = shalt.err (!%p193_p9)
}
  0x14   :  { %s203_s20 = smov 128   ;;  %s204_s21 = smov 8  }
  0x15   :  { %31 = dma.hbm_to_vmem [thread:$0]  %s240_s1, 512, %s26_s15, [#allocation5], %s203_s20, %s203_s20, %s204_s21  }
  0x16   :  { %197 = dma.done.wait [#allocation3], 128  }
  0x17   :  { %198 = vsyncadd [#allocation3], 4294967168 }
  0x18   :  { %199 = dma.done.wait [#allocation5], 512  }
  0x19   :  { %200 = vsyncadd [#allocation5], 4294966784  ;;  %v205_v0 = vmov 0.0   ;;  %vm206_vm0 = vmmov 0   ;;  %v44_v1 = vld [vmem:[#allocation4 + $0x18] sm:$0xff]  ;;  %v43_v2 = vld [vmem:[#allocation4 + $0x10] sm:$0xff] }
  0x1a   :  { %140 = vmatprep.subr.mxu0 %v205_v0  ;;  %148 = vmatprep.mubr.msk.f32.mxu0 %vm206_vm0, %v205_v0  ;;  %v42_v3 = vld [vmem:[#allocation4 + $0x8] sm:$0xff]  ;;  %v41_v4 = vld [vmem:[#allocation4] sm:$0xff]  ;;  %v40_v5 = vld [vmem:[#allocation2] sm:$0xff]  ;;  %vm52_vm1 = vcmask 261120  }
  0x1b   :  { %141 = vmatpush3.msra.mxu0 %v44_v1  ;;  %v133_v6 = vld [vmem:[%s241_s2] ss:$0 sm:$0xff] }
  0x1c   :  { %142 = vmatprep.subr.mxu0 %v205_v0 }
  0x1d   :  { %143 = vmatpush3.msra.mxu0 %v43_v2 }
  0x1e   :  { %144 = vmatprep.subr.mxu0 %v205_v0 }
  0x1f   :  { %145 = vmatpush3.msra.mxu0 %v42_v3 }
  0x20   :  { %146 = vmatprep.subr.mxu0 %v205_v0 }
  0x21   :  { %147 = vmatpush3.msra.mxu0 %v41_v4 }
  0x22   :  { %149 = vmatmul.mubr.msk.f32.vlgmr.msra.gmra.mxu0 %vm52_vm1, %v40_v5 }
  0xe2   :  { %v122_v7 = vpop.f32.mrf.mxu0 }
  0xe3   :  { %v123_v8 = vadd.f32 %v133_v6, %v122_v7 }
  0xe4   :  { %v150_v9 = vpop.f32.mrf.mxu0 }
  0xe5   :  { %126 = vst [vmem:[%s242_s3] sm:$0xff] %v123_v8 }
  0xe6   :  { %131 = vsyncpa [#allocation3], 1 }
  0xe7   :  { %132 = vsyncpa [#allocation5], 1 }

</bundles_post_ra>
